<compile_context>
chip_gen: v6e
topology: v6e:2x2x1
jax: 0.10.0
libtpu: 0.0.40
codegen_flags: <defaults>
</compile_context>

<pallas_src>
import functools

import jax
import jax.numpy as jnp
from jax import lax
from jax.experimental import pallas as pl
from jax.experimental.pallas import tpu as pltpu

DEGREE = 3
NUM_ITERATIONS = 5
NUM_POLY_TERMS = (DEGREE + 1) // 2          # = 2
INITIAL_SCALE = 1.1


def _ns_kernel(coef_ref, x_ref, o_ref, *, num_iterations, num_terms):
    """coef_ref: SMEM (num_terms,) f32; x_ref/o_ref: VMEM (bt, R, C), R <= C."""
    X = x_ref[...].astype(jnp.float32)                      # (bt, R, C)

    # Per-matrix Frobenius normalization * 1.1 via rsqrt (EUP slot).
    # No epsilon guard, matching the PyTorch module.
    sumsq = jnp.sum(X * X, axis=(-2, -1), keepdims=True)
    X = X * (INITIAL_SCALE * lax.rsqrt(sumsq))

    # Hoist SMEM scalar coefficient reads out of the unrolled iteration loop.
    c = [coef_ref[t] for t in range(num_terms)]

    if num_terms == 1:                                      # degenerate degree-1 path
        for _ in range(num_iterations):
            X = c[0] * X
        o_ref[...] = X.astype(o_ref.dtype)
        return

    # Identity mask for the c0 diagonal fold -- built once, hoisted out of the
    # loop (JAX does not CSE broadcast/iota).
    R = x_ref.shape[-2]
    rows = lax.broadcasted_iota(jnp.int32, (R, R), 0)
    cols = lax.broadcasted_iota(jnp.int32, (R, R), 1)
    eye = (rows == cols).astype(jnp.float32)                # (R, R)

    for _ in range(num_iterations):
        Xb = X.astype(jnp.bfloat16)
        # Gram G = X X^T: contract last dims of both operands (native
        # transposed-RHS MXU form, no XLU transpose); bf16 operands, f32 acc.
        G = jnp.einsum('bik,bjk->bij', Xb, Xb,
                       preferred_element_type=jnp.float32)  # (bt, R, R)

        # A = sum_t c_t G^t via Horner on the small R x R matrices; for the
        # degree-3 case this is just A = c1*G + c0*I (a diagonal add).
        A = c[num_terms - 1] * G + c[num_terms - 2] * eye
        if num_terms > 2:
            Gb = G.astype(jnp.bfloat16)
            for t in range(num_terms - 3, -1, -1):
                A = jnp.einsum('bik,bkj->bij', A.astype(jnp.bfloat16), Gb,
                               preferred_element_type=jnp.float32) + c[t] * eye

        # X <- A X  ==  sum_t c_t X (X^T X)^t : one MXU pass, no extra
        # full-size VPU multiply/add.
        X = jnp.einsum('bik,bkj->bij', A.astype(jnp.bfloat16), Xb,
                       preferred_element_type=jnp.float32)

    o_ref[...] = X.astype(o_ref.dtype)


def _vmem_capacity_bytes():
    """Physical VMEM per TensorCore (128 MiB v5e/v6e, 64 MiB v7x)."""
    try:
        return int(pltpu.get_tpu_info().vmem_capacity_bytes)
    except Exception:
        return 64 << 20   # conservative default (v7x per-TensorCore VMEM)


def _block_vmem_bytes(bt, r, c, io_buffers=2):
    """Rough per-grid-step VMEM footprint for block-batch size `bt`."""
    mn = r * c
    io = 2 * io_buffers * mn * 4        # pipelined input + output blocks (f32)
    work = mn * (2 * 4 + 2)             # X (f32), new X (f32), X (bf16)
    gram = r * r * (4 + 4 + 2)          # G (f32), A (f32), A (bf16)
    return bt * (io + work + gram)


def _choose_block_batch(b, r, c, budget):
    """Pick matrices-per-grid-step `bt`; returns (bt, single_buffered_io)."""
    per = _block_vmem_bytes(1, r, c)
    if per > budget:
        # Even one matrix exceeds the budget: single-buffer the in/out blocks
        # (saves 2*4*R*C bytes each).  A row-tiled two-pass variant would be
        # the next step for even larger matrices.
        return 1, True
    bt = max(1, min(b, budget // per))
    if b >= 2:
        # Keep at least two grid steps so ("parallel",) can shard the batch
        # axis across both v7x TensorCores.
        bt = min(bt, pl.cdiv(b, 2))
    # Shrink bt to the smallest value giving the same number of grid steps,
    # minimizing wrapper-side tail padding for awkward batch sizes.
    bt = pl.cdiv(b, pl.cdiv(b, bt))
    return int(bt), False


def generalized_newton_schulz(x, coefficients, num_iterations=NUM_ITERATIONS):
    """x: (B, M, N) float array; coefficients: (num_terms,) float array."""
    B, M, N = x.shape
    coefficients = jnp.asarray(coefficients, jnp.float32)
    num_terms = int(coefficients.shape[0])

    # Always iterate on the orientation with rows <= cols so the Gram matrix
    # is min(M, N)^2 (mathematically exact; see module docstring).
    transpose = M > N
    x_work = jnp.swapaxes(x, -2, -1) if transpose else x
    R, C = (N, M) if transpose else (M, N)

    vmem_cap = _vmem_capacity_bytes()
    budget = (3 * vmem_cap) // 4        # ~96 MiB on v5e/v6e, ~48 MiB on v7x
    bt, single_buffered = _choose_block_batch(B, R, C, budget)
    grid_b = int(pl.cdiv(B, bt))
    b_padded = grid_b * bt
    if b_padded != B:
        pad = jnp.broadcast_to(x_work[-1:], (b_padded - B, R, C))
        x_work = jnp.concatenate([x_work, pad], axis=0)

    io_buffers = 1 if single_buffered else 2
    est = _block_vmem_bytes(bt, R, C, io_buffers)
    if single_buffered:
        vmem_limit = vmem_cap - (8 << 20)
    else:
        vmem_limit = min(budget, max(32 << 20, (3 * est) // 2))

    def data_spec():
        if single_buffered:
            return pl.BlockSpec((bt, R, C), lambda i: (i, 0, 0),
                                pipeline_mode=pl.Buffered(1))
        return pl.BlockSpec((bt, R, C), lambda i: (i, 0, 0))

    kernel = functools.partial(
        _ns_kernel, num_iterations=num_iterations, num_terms=num_terms)

    out = pl.pallas_call(
        kernel,
        out_shape=jax.ShapeDtypeStruct((b_padded, R, C), x.dtype),
        grid_spec=pltpu.PrefetchScalarGridSpec(
            num_scalar_prefetch=0,
            grid=(grid_b,),
            in_specs=[
                pl.BlockSpec(memory_space=pltpu.MemorySpace.SMEM),  # coefficients
                data_spec(),                                        # X block
            ],
            out_specs=data_spec(),
        ),
        compiler_params=pltpu.CompilerParams(
            dimension_semantics=("parallel",),
            vmem_limit_bytes=int(vmem_limit)),
    )(coefficients, x_work)

    out = out[:B]
    if transpose:
        out = jnp.swapaxes(out, -2, -1)
    return out


def _reference(x, coefficients, num_iterations=NUM_ITERATIONS):
    """Pure-JAX f32 reference mirroring the PyTorch forward exactly."""
    coefficients = jnp.asarray(coefficients, jnp.float32)
    fro = jnp.sqrt(jnp.sum(x * x, axis=(-2, -1), keepdims=True))
    X = x / fro * INITIAL_SCALE
    for _ in range(num_iterations):
        XT = jnp.swapaxes(X, -2, -1)
        XTX = jnp.matmul(XT, X)
        terms = [X]
        for _ in range(coefficients.shape[0] - 1):
            terms.append(jnp.matmul(terms[-1], XTX))
        X = sum(c * t for c, t in zip(coefficients, terms))
    return X


if __name__ == "__main__":
    key = jax.random.PRNGKey(0)

    # Canonical degree-3 Newton-Schulz polynomial 1.5*X - 0.5*X(X^T X).
    # (Raw randn coefficients can make the recursion diverge, which would make
    # any finite-precision comparison meaningless.)
    coefficients = jnp.asarray([1.5, -0.5], dtype=jnp.float32)

    key, k1, k2 = jax.random.split(key, 3)

    # Square tiny-matrix case (typical module usage).
    B, M, N = 2, 16, 16
    x = jax.random.normal(k1, (B, M, N), dtype=jnp.float32)
    out = jax.block_until_ready(generalized_newton_schulz(x, coefficients))
    ref = _reference(x, coefficients)
    assert out.shape == (B, M, N)
    err = float(jnp.max(jnp.abs(out - ref)))
    # bf16 MXU operands (incl. the folded c0 path) vs. exact-f32 reference.
    assert jnp.allclose(out, ref, atol=2e-2, rtol=2e-2), f"max abs err {err}"

    # Tall + awkward-batch case: exercises the small-side (transposed) Gram
    # path and the tail-padding / >=2-grid-step logic.
    B2, M2, N2 = 3, 24, 16
    x2 = jax.random.normal(k2, (B2, M2, N2), dtype=jnp.float32)
    out2 = jax.block_until_ready(generalized_newton_schulz(x2, coefficients))
    ref2 = _reference(x2, coefficients)
    assert out2.shape == (B2, M2, N2)
    err2 = float(jnp.max(jnp.abs(out2 - ref2)))
    assert jnp.allclose(out2, ref2, atol=2e-2, rtol=2e-2), f"max abs err {err2}"

    print("KERNEL_OK")
</pallas_src>

<mosaic_0001>
module attributes {stable_mosaic.version = 11 : i64} {
  func.func @_ns_kernel(%arg0: i32, %arg1: memref<2xf32, #tpu.memory_space<smem>>, %arg2: memref<1x16x16xf32, #tpu.memory_space<vmem>>, %arg3: memref<1x16x16xf32, #tpu.memory_space<vmem>>) attributes {dimension_semantics = [#tpu.dimension_semantics<parallel>], iteration_bounds = array<i64: 2>, scalar_prefetch = 0 : i64, scratch_operands = 0 : i64, tpu.core_type = #tpu.core_type<tc>, window_params = [{transform_indices = @transform_0, window_bounds = array<i64: 2>}, {transform_indices = @transform_1, window_bounds = array<i64: 1, 16, 16>}, {transform_indices = @transform_2, window_bounds = array<i64: 1, 16, 16>}]} {
    %c0 = arith.constant 0 : index
    %c0_0 = arith.constant 0 : index
    %c0_1 = arith.constant 0 : index
    %0 = vector.load %arg2[%c0, %c0_0, %c0_1] : memref<1x16x16xf32, #tpu.memory_space<vmem>>, vector<1x16x16xf32>
    %1 = arith.mulf %0, %0 : vector<1x16x16xf32>
    %cst = arith.constant dense<0.000000e+00> : vector<1xf32>
    %2 = vector.multi_reduction <add>, %1, %cst [1, 2] : vector<1x16x16xf32> to vector<1xf32>
    %3 = vector.shape_cast %2 : vector<1xf32> to vector<1x1x1xf32>
    %4 = math.rsqrt %3 : vector<1x1x1xf32>
    %cst_2 = arith.constant 1.100000e+00 : f32
    %5 = vector.broadcast %cst_2 : f32 to vector<1x1x1xf32>
    %6 = arith.mulf %5, %4 : vector<1x1x1xf32>
    %7 = vector.broadcast %6 : vector<1x1x1xf32> to vector<1x16x16xf32>
    %8 = arith.mulf %0, %7 : vector<1x16x16xf32>
    %c0_3 = arith.constant 0 : index
    %9 = memref.load %arg1[%c0_3] : memref<2xf32, #tpu.memory_space<smem>>
    %c1 = arith.constant 1 : index
    %10 = memref.load %arg1[%c1] : memref<2xf32, #tpu.memory_space<smem>>
    %11 = tpu.iota {dimensions = array<i32: 0>} : vector<16x16xi32>
    %12 = tpu.iota {dimensions = array<i32: 1>} : vector<16x16xi32>
    %13 = arith.cmpi eq, %11, %12 : vector<16x16xi32>
    %14 = arith.extui %13 : vector<16x16xi1> to vector<16x16xi32>
    %15 = arith.sitofp %14 : vector<16x16xi32> to vector<16x16xf32>
    %16 = arith.truncf %8 : vector<1x16x16xf32> to vector<1x16x16xbf16>
    "tpu.trace_start"() <{level = 10 : i32, message = "bik,bjk->bij"}> : () -> ()
    %cst_4 = arith.constant dense<0.000000e+00> : vector<1x16x16xf32>
    %17 = tpu.matmul %16, %16, %cst_4 {dimension_numbers = #tpu.dot_dimension_numbers<[2], [2], [1], [1], [0, 0, 0, 1, 1, 1], [0], [0]>} : vector<1x16x16xbf16>, vector<1x16x16xbf16>, vector<1x16x16xf32> -> vector<1x16x16xf32>
    "tpu.trace_stop"() : () -> ()
    %18 = vector.broadcast %10 : f32 to vector<1x16x16xf32>
    %19 = arith.mulf %18, %17 : vector<1x16x16xf32>
    %20 = vector.broadcast %9 : f32 to vector<16x16xf32>
    %21 = arith.mulf %20, %15 : vector<16x16xf32>
    %22 = vector.shape_cast %21 : vector<16x16xf32> to vector<1x16x16xf32>
    %23 = arith.addf %19, %22 : vector<1x16x16xf32>
    %24 = arith.truncf %23 : vector<1x16x16xf32> to vector<1x16x16xbf16>
    "tpu.trace_start"() <{level = 10 : i32, message = "bik,bkj->bij"}> : () -> ()
    %cst_5 = arith.constant dense<0.000000e+00> : vector<1x16x16xf32>
    %25 = tpu.matmul %24, %16, %cst_5 {dimension_numbers = #tpu.dot_dimension_numbers<[2], [1], [1], [2], [0, 0, 0, 1, 1, 2], [0], [0]>} : vector<1x16x16xbf16>, vector<1x16x16xbf16>, vector<1x16x16xf32> -> vector<1x16x16xf32>
    "tpu.trace_stop"() : () -> ()
    %26 = arith.truncf %25 : vector<1x16x16xf32> to vector<1x16x16xbf16>
    "tpu.trace_start"() <{level = 10 : i32, message = "bik,bjk->bij"}> : () -> ()
    %cst_6 = arith.constant dense<0.000000e+00> : vector<1x16x16xf32>
    %27 = tpu.matmul %26, %26, %cst_6 {dimension_numbers = #tpu.dot_dimension_numbers<[2], [2], [1], [1], [0, 0, 0, 1, 1, 1], [0], [0]>} : vector<1x16x16xbf16>, vector<1x16x16xbf16>, vector<1x16x16xf32> -> vector<1x16x16xf32>
    "tpu.trace_stop"() : () -> ()
    %28 = vector.broadcast %10 : f32 to vector<1x16x16xf32>
    %29 = arith.mulf %28, %27 : vector<1x16x16xf32>
    %30 = vector.broadcast %9 : f32 to vector<16x16xf32>
    %31 = arith.mulf %30, %15 : vector<16x16xf32>
    %32 = vector.shape_cast %31 : vector<16x16xf32> to vector<1x16x16xf32>
    %33 = arith.addf %29, %32 : vector<1x16x16xf32>
    %34 = arith.truncf %33 : vector<1x16x16xf32> to vector<1x16x16xbf16>
    "tpu.trace_start"() <{level = 10 : i32, message = "bik,bkj->bij"}> : () -> ()
    %cst_7 = arith.constant dense<0.000000e+00> : vector<1x16x16xf32>
    %35 = tpu.matmul %34, %26, %cst_7 {dimension_numbers = #tpu.dot_dimension_numbers<[2], [1], [1], [2], [0, 0, 0, 1, 1, 2], [0], [0]>} : vector<1x16x16xbf16>, vector<1x16x16xbf16>, vector<1x16x16xf32> -> vector<1x16x16xf32>
    "tpu.trace_stop"() : () -> ()
    %36 = arith.truncf %35 : vector<1x16x16xf32> to vector<1x16x16xbf16>
    "tpu.trace_start"() <{level = 10 : i32, message = "bik,bjk->bij"}> : () -> ()
    %cst_8 = arith.constant dense<0.000000e+00> : vector<1x16x16xf32>
    %37 = tpu.matmul %36, %36, %cst_8 {dimension_numbers = #tpu.dot_dimension_numbers<[2], [2], [1], [1], [0, 0, 0, 1, 1, 1], [0], [0]>} : vector<1x16x16xbf16>, vector<1x16x16xbf16>, vector<1x16x16xf32> -> vector<1x16x16xf32>
    "tpu.trace_stop"() : () -> ()
    %38 = vector.broadcast %10 : f32 to vector<1x16x16xf32>
    %39 = arith.mulf %38, %37 : vector<1x16x16xf32>
    %40 = vector.broadcast %9 : f32 to vector<16x16xf32>
    %41 = arith.mulf %40, %15 : vector<16x16xf32>
    %42 = vector.shape_cast %41 : vector<16x16xf32> to vector<1x16x16xf32>
    %43 = arith.addf %39, %42 : vector<1x16x16xf32>
    %44 = arith.truncf %43 : vector<1x16x16xf32> to vector<1x16x16xbf16>
    "tpu.trace_start"() <{level = 10 : i32, message = "bik,bkj->bij"}> : () -> ()
    %cst_9 = arith.constant dense<0.000000e+00> : vector<1x16x16xf32>
    %45 = tpu.matmul %44, %36, %cst_9 {dimension_numbers = #tpu.dot_dimension_numbers<[2], [1], [1], [2], [0, 0, 0, 1, 1, 2], [0], [0]>} : vector<1x16x16xbf16>, vector<1x16x16xbf16>, vector<1x16x16xf32> -> vector<1x16x16xf32>
    "tpu.trace_stop"() : () -> ()
    %46 = arith.truncf %45 : vector<1x16x16xf32> to vector<1x16x16xbf16>
    "tpu.trace_start"() <{level = 10 : i32, message = "bik,bjk->bij"}> : () -> ()
    %cst_10 = arith.constant dense<0.000000e+00> : vector<1x16x16xf32>
    %47 = tpu.matmul %46, %46, %cst_10 {dimension_numbers = #tpu.dot_dimension_numbers<[2], [2], [1], [1], [0, 0, 0, 1, 1, 1], [0], [0]>} : vector<1x16x16xbf16>, vector<1x16x16xbf16>, vector<1x16x16xf32> -> vector<1x16x16xf32>
    "tpu.trace_stop"() : () -> ()
    %48 = vector.broadcast %10 : f32 to vector<1x16x16xf32>
    %49 = arith.mulf %48, %47 : vector<1x16x16xf32>
    %50 = vector.broadcast %9 : f32 to vector<16x16xf32>
    %51 = arith.mulf %50, %15 : vector<16x16xf32>
    %52 = vector.shape_cast %51 : vector<16x16xf32> to vector<1x16x16xf32>
    %53 = arith.addf %49, %52 : vector<1x16x16xf32>
    %54 = arith.truncf %53 : vector<1x16x16xf32> to vector<1x16x16xbf16>
    "tpu.trace_start"() <{level = 10 : i32, message = "bik,bkj->bij"}> : () -> ()
    %cst_11 = arith.constant dense<0.000000e+00> : vector<1x16x16xf32>
    %55 = tpu.matmul %54, %46, %cst_11 {dimension_numbers = #tpu.dot_dimension_numbers<[2], [1], [1], [2], [0, 0, 0, 1, 1, 2], [0], [0]>} : vector<1x16x16xbf16>, vector<1x16x16xbf16>, vector<1x16x16xf32> -> vector<1x16x16xf32>
    "tpu.trace_stop"() : () -> ()
    %56 = arith.truncf %55 : vector<1x16x16xf32> to vector<1x16x16xbf16>
    "tpu.trace_start"() <{level = 10 : i32, message = "bik,bjk->bij"}> : () -> ()
    %cst_12 = arith.constant dense<0.000000e+00> : vector<1x16x16xf32>
    %57 = tpu.matmul %56, %56, %cst_12 {dimension_numbers = #tpu.dot_dimension_numbers<[2], [2], [1], [1], [0, 0, 0, 1, 1, 1], [0], [0]>} : vector<1x16x16xbf16>, vector<1x16x16xbf16>, vector<1x16x16xf32> -> vector<1x16x16xf32>
    "tpu.trace_stop"() : () -> ()
    %58 = vector.broadcast %10 : f32 to vector<1x16x16xf32>
    %59 = arith.mulf %58, %57 : vector<1x16x16xf32>
    %60 = vector.broadcast %9 : f32 to vector<16x16xf32>
    %61 = arith.mulf %60, %15 : vector<16x16xf32>
    %62 = vector.shape_cast %61 : vector<16x16xf32> to vector<1x16x16xf32>
    %63 = arith.addf %59, %62 : vector<1x16x16xf32>
    %64 = arith.truncf %63 : vector<1x16x16xf32> to vector<1x16x16xbf16>
    "tpu.trace_start"() <{level = 10 : i32, message = "bik,bkj->bij"}> : () -> ()
    %cst_13 = arith.constant dense<0.000000e+00> : vector<1x16x16xf32>
    %65 = tpu.matmul %64, %56, %cst_13 {dimension_numbers = #tpu.dot_dimension_numbers<[2], [1], [1], [2], [0, 0, 0, 1, 1, 2], [0], [0]>} : vector<1x16x16xbf16>, vector<1x16x16xbf16>, vector<1x16x16xf32> -> vector<1x16x16xf32>
    "tpu.trace_stop"() : () -> ()
    %c0_14 = arith.constant 0 : index
    %c0_15 = arith.constant 0 : index
    %c0_16 = arith.constant 0 : index
    %66 = vector.load %arg3[%c0_14, %c0_15, %c0_16] : memref<1x16x16xf32, #tpu.memory_space<vmem>>, vector<1x16x16xf32>
    tpu.vector_store %arg3[%c0_14, %c0_15, %c0_16], %65 {strides = array<i32>} : memref<1x16x16xf32, #tpu.memory_space<vmem>>, vector<1x16x16xf32>,
    return
  }
  func.func @transform_0(%arg0: i32) -> i32 {
    %c0_i32 = arith.constant 0 : i32
    %c0_i32_0 = arith.constant 0 : i32
    return %c0_i32 : i32
  }
  func.func @transform_1(%arg0: i32) -> (i32, i32, i32) {
    %c0_i32 = arith.constant 0 : i32
    %c0_i32_0 = arith.constant 0 : i32
    %c0_i32_1 = arith.constant 0 : i32
    return %arg0, %c0_i32, %c0_i32_0 : i32, i32, i32
  }
  func.func @transform_2(%arg0: i32) -> (i32, i32, i32) {
    %c0_i32 = arith.constant 0 : i32
    %c0_i32_0 = arith.constant 0 : i32
    %c0_i32_1 = arith.constant 0 : i32
    return %arg0, %c0_i32, %c0_i32_0 : i32, i32, i32
  }
}

</mosaic_0001>

<bundles_post_ra>
// kernel: tpu_custom_call.1
= control target key start
LH: loop header
LB: loop body
LE: loop exit
PB: predicated region body
PF: predicated region fallthrough
CT: control target
= control target key end

     0   :  { %7 = vsyncpa [#allocation5], 0  ;;  %s1346_s0 = inlined_call_operand.hbm [shape: f32[2], index: 0, kind: input, shape index: {}]   ;;  %s1347_s1 = inlined_call_operand.hbm [shape: f32[2,16,16], index: 1, kind: input, shape index: {}]   ;;  %s1348_s2 = inlined_call_operand.hbm [shape: f32[2,16,16], index: 2, kind: output, shape index: {}]  }
   0x1   :  { %8 = vsyncpa [#allocation3], 0 }
   0x2   :  { %10 = vsyncpa [#allocation3 + $0x1], 0 }
   0x3   :  { %11 = vsyncpa [#allocation4], 0 }
   0x4   :  { %13 = vsyncpa [#allocation4 + $0x1], 0  ;;  %s1092_s9 = smov 0   ;;  %s1094_s10 = smov 0  }
   0x5   :  { %s1096_s11 = smov 0   ;;  %s1098_s12 = smov 0  }
   0x6 LB: > { %s1113_s13 = sadd.s32 4294967295, %s1066_s12   ;;  %s783_s14 = sadd.s32 4294967294, %s1066_s12   ;;  %s1066_s12 = sphi %s1098_s12, %s1370_s12   ;;  %s1062_s11 = sphi %s1096_s11, %s1369_s11   ;;  %s1058_s10 = sphi %s1094_s10, %s1368_s10   ;;  %s1054_s9 = sphi %s1092_s9, %s1367_s9  }
   0x7   : > { %s1117_s15 = sadd.s32 1, %s1066_s12   ;;  %s47_s16 = sadd.s32 1, %s1062_s11 }
   0x8   : > { %s44_s17 = ssub.s32 %s1066_s12, %s1117_s15  ;;  %p54_p0 = scmp.ne.s32.totalorder %s1062_s11, %s1058_s10 }
   0x9   : > { %p45_p1 = scmp.eq.s32.totalorder %s44_s17, 0  ;;  %p55_p2 = scmp.eq.s32.totalorder %s1066_s12, 0 }
   0xa   : > { %p60_p3 = scmp.ne.s32.totalorder %s1058_s10, %s1054_s9  ;;  %p1349_p4 = scmp.eq.s32.totalorder %s1113_s13, 0 }
   0xb   : > { %s1129_s18 = scalar_select %p45_p1, %s1062_s11, %s47_s16  }
   0xc   : > { %p1131_p5 = por %p55_p2, %p54_p0  ;;  %p1137_p6 = por %p1349_p4, %p60_p3 }
   0xd   : > { %p84_p7 = scmp.eq.s32.totalorder %s1113_s13, 1  ;;  %p90_p8 = scmp.eq.s32.totalorder %s783_s14, 1 }
   0xe   : > { %s1354_s20 = scalar_select %p1137_p6, 1, 0 }
   0xf   : > { %p784_p9 = scmp.ge.s32.totalorder %s1066_s12, 1  ;;  %p97_p10 = scmp.lt.s32.totalorder %s1066_s12, 3 }
  0x10   : > { %p1144_p11 = por %p84_p7, %p54_p0  ;;  %p1148_p12 = por %p90_p8, %p60_p3 }
  0x11   : > { %p1152_p13 = pnand %p784_p9, %p97_p10  ;;  %p915_p4 = scmp.lt.s32.totalorder %s1066_s12, 2 }
  0x12   : > { %s1355_s21 = scalar_select %p1144_p11, 1, 0 }
  0x13   : > { %s1356_s22 = scalar_select %p1148_p12, 1, 0 }
  0x14   : > { %s1357_s23 = scalar_select %p1152_p13, 1, 0 }
  0x15   : > { %p902_p2 = pneg %p1152_p13  ;;  %s119_s24 = sand.u32 1, %s1062_s11  }
  0x16   : > { %s812_s25 = sshll.u32 %s1066_s12, 8  ;;  %p1358_p6 = scmp.eq.s32.totalorder %s1113_s13, 0 }
  0x17   : > { %p1166_p7 = pnand %p915_p4, %p1131_p5  ;;  %s787_s27 = sshll.u32 %s119_s24, 4 }
  0x18   : > { %p903_p0 = pnand %p902_p2, %p1358_p6  ;;  %s1068_s28 = smov [#allocation2]  }
  0x19   : > { %s1176_s5 = scalar_lea.hbm %s1347_s1, %s812_s25  ;;  %s123_s6 = scalar_lea.vmem [#allocation6], %s787_s27 }
  0x1a   : > { %905 = dma.hbm_to_smem (!%p903_p0), %s1346_s0, 16, %s1068_s28, [#allocation5]  }
  0x1b   : > { %s130_s7 = sshll.u32 %s123_s6, 4  ;;  %s1180_s8 = scalar_lea.sflag [#allocation3], %s119_s24  ;;  %s1178_s7 = int_to_ptr.vmem [resolvable:$true] %s130_s7 }
  0x1c   : > { %s970_s14 = scalar_lea.hbm %s1176_s5, 256  ;;  %p972_p4 = pneg %p1166_p7 }
  0x1d   : > { %p971_p3 = scmp.ne.s32.totalorder %s1176_s5, %s970_s14  ;;  %s975_s19 = scalar_lea.hbm %s1347_s1, 512 }
  0x1e   : > { %p976_p8 = scmp.lt.s32.totalorder %s1176_s5, %s1347_s1  ;;  %p977_p9 = scmp.lt.s32.totalorder %s975_s19, %s970_s14 }
  0x1f   : > { %p973_p5 = pnand %p972_p4, %p971_p3 }
  0x20   : > { %p978_p10 = por %p977_p9, %p976_p8 }
  0x21   : > { %p974_p6 = pneg %p973_p5 }
  0x23   : > { %p979_p2 = pnand %p978_p10, %p974_p6 }
  0x25   : > { %982 = shalt.err (!%p979_p2)
}
  0x26   : > { %s983_s24 = scalar_lea.vmem %s1178_s7, 256  ;;  %s1069_s27 = smov [#allocation6]  }
  0x27   : > { %p984_p0 = scmp.ne.s32.totalorder %s1178_s7, %s983_s24  ;;  %s988_s29 = sshll.u32 %s1069_s27, 4  ;;  %s989_s29 = int_to_ptr.vmem [resolvable:$false] %s988_s29 }
  0x28   : > { %s990_s30 = scalar_lea.vmem %s989_s29, 512  ;;  %p991_p5 = scmp.lt.s32.totalorder %s1178_s7, %s989_s29 }
  0x29   : > { %p986_p1 = pnand %p984_p0, %p972_p4  ;;  %p992_p12 = scmp.lt.s32.totalorder %s990_s30, %s983_s24 }
  0x2b   : > { %p987_p3 = pneg %p986_p1  ;;  %p993_p11 = por %p992_p12, %p991_p5 }
  0x2d   : > { %p994_p13 = pnand %p993_p11, %p987_p3 }
  0x2f   : > { %997 = shalt.err (!%p994_p13)
}
  0x30   : > { %s1070_s3 = smov 128   ;;  %s1071_s4 = smov 8  }
  0x31   : > { %909 = dma.hbm_to_vmem [thread:$0]  (!%p1166_p7), %s1176_s5, 256, %s1178_s7, %s1180_s8, %s1070_s3, %s1070_s3, %s1071_s4  }
  0x32   : > { %p1360_p4 = scmp.ne.s32.totalorder %s1357_s23, 0 }
  0x33   : > { %p1361_p1 = scmp.eq.s32.totalorder (!%p1360_p4), %s1113_s13, 0 }
  0x34   : > { %142 = sbr.rel (%p1360_p4) target bundleno = 2303 (0x8ff), region = 28 }
  0x39   : > { %1041 = dma.done.wait (%p1361_p1), [#allocation5], 16   ;;  %p1362_p6 = pmov %p1361_p1 }
  0x3a   : > { %s1208_s6 = sand.u32 1, %s1058_s10   ;;  %p1363_p11 = scmp.ne.s32.totalorder %s1354_s20, 0 }
  0x3b   : > { %1043 = vsyncadd (%p1362_p6), [#allocation5], 4294967280  ;;  %s792_s14 = sshll.u32 %s1208_s6, 4  ;;  %s149_s16 = scalar_lea.sflag [#allocation3], %s1208_s6 }
  0x3c   : > { %s152_s26 = scalar_lea.vmem [#allocation6], %s792_s14 }
  0x3d   : > { %1045 = dma.done.wait (%p1363_p11), %s149_s16, 256  }
  0x3e   : > { %1047 = vsyncadd (%p1363_p11), %s149_s16, 4294967040 }
  0x3f   : > { %157 = sfence }
  0x40   : > { %v175_v0 = vld [vmem:[%s152_s26] sm:$0xff]  ;;  %v176_v1 = vld [vmem:[%s152_s26 + $0x8] sm:$0xff]  ;;  %vm179_vm0 = vcmask 130048   ;;  %v1072_v7 = vmov 0.0   ;;  %vm1073_vm1 = vmmov 0   ;;  %v197_v21 = vlaneseq  ;;  %s195_s20 = sld [smem:[#allocation2]] }
  0x41   : > { %v177_v2 = vmul.f32 %v175_v0, %v175_v0  ;;  %v178_v3 = vmul.f32 %v176_v1, %v176_v1  ;;  %840 = vmatprep.subr.bf16.mxu1 %v1072_v7  ;;  %834 = vmatprep.subr.bf16.mxu0 %v1072_v7  ;;  %s794_s23 = sld [smem:[#allocation2 + $0x1]]  ;;  %s173_s5 = scalar_lea.vmem [#allocation7], %s792_s14 }
  0x42   : > { %836 = vmatprep.mubr.msk.bf16.mxu0 %vm1073_vm1, %v1072_v7  ;;  %842 = vmatprep.mubr.msk.bf16.mxu1 %vm1073_vm1, %v1072_v7  ;;  %v198_v22 = vshrl.u32 %v197_v21, 7  ;;  %v201_v23 = vand.u32 127, %v197_v21  ;;  %s698_s7 = sshll.u32 %s173_s5, 4  ;;  %s813_s8 = sshll.u32 %s1113_s13, 8  ;;  %s1297_s7 = int_to_ptr.vmem [resolvable:$true] %s698_s7 }
  0x43   : > { %v180_v4 = vsel %vm179_vm0, %v177_v2, 0.0  ;;  %v181_v5 = vsel %vm179_vm0, %v178_v3, 0.0  ;;  %s1302_s25 = scalar_lea.hbm %s1348_s2, %s813_s8  ;;  %s685_s28 = scalar_lea.sflag [#allocation4], %s1208_s6 }
  0x44   : > { %v182_v6 = vadd.f32 %v181_v5, %v180_v4  ;;  %v199_v24 = vadd.s32 8, %v198_v22  ;;  %vm202_vm2 = vcmp.eq.s32.totalorder %v198_v22, %v201_v23  ;;  %s998_s13 = scalar_lea.vmem %s1297_s7, 256  ;;  %p1364_p13 = scmp.ne.s32.totalorder %s1355_s21, 0 }
  0x45   : > { %v795_v25 = vsel %vm202_vm2, 1.0, %v1072_v7  ;;  %p999_p12 = scmp.ne.s32.totalorder %s1297_s7, %s998_s13  ;;  %s1074_s24 = smov [#allocation7]  }
  0x46   : > { %183 = vadd.xlane.f32.xlu0 %v182_v6  ;;  %vm203_vm3 = vcmp.eq.s32.totalorder %v199_v24, %v201_v23  ;;  %v256_v28 = vstv %s195_s20  ;;  %s1002_s27 = sshll.u32 %s1074_s24, 4  ;;  %s1003_s27 = int_to_ptr.vmem [resolvable:$false] %s1002_s27 }
  0x47   : > { %v1233_v27 = vstv %s794_s23  ;;  %v796_v29 = vsel %vm203_vm3, 1.0, %v1072_v7  ;;  %v1237_v32 = vmul.f32 %v795_v25, %v256_v28  ;;  %p1000_p7 = pnand %p999_p12, %p1364_p13  ;;  %s1004_s29 = scalar_lea.vmem %s1003_s27, 512 }
  0x48   : > { %v1239_v33 = vmul.f32 %v796_v29, %v256_v28  ;;  %p1005_p9 = scmp.lt.s32.totalorder %s1297_s7, %s1003_s27  ;;  %p1006_p10 = scmp.lt.s32.totalorder %s1004_s29, %s998_s13 }
  0x49   : > { %p1001_p8 = pneg %p1000_p7 }
  0x4a   : > { %p1007_p2 = por %p1006_p10, %p1005_p9 }
  0x4c   : > { %p1008_p0 = pnand %p1007_p2, %p1001_p8 }
  0xcf   : > { %v184_v8 = vpop.xlane.xlu0 %183 }
  0xd0   : > { %v185_v9 = vrot.slane %v184_v8, 4 }
  0xd2   : > { %v186_v10 = vadd.f32 %v185_v9, %v184_v8 }
  0xd4   : > { %v187_v11 = vrot.slane %v186_v10, 2 }
  0xd6   : > { %v188_v12 = vadd.f32 %v187_v11, %v186_v10 }
  0xd8   : > { %v189_v13 = vrot.slane %v188_v12, 1 }
  0xda   : > { %v190_v14 = vadd.f32 %v189_v13, %v188_v12 }
  0xdc   : > { %957 = vrsqrt.f32 %v190_v14 }
  0xe9   : > { %v958_v15 = vpop.eup %957 }
  0xea   : > { %v192_v16 = vmul.f32 1.1, %v958_v15 }
  0xec   : > { %v193_v17 = vmul.f32 %v192_v16, %v175_v0  ;;  %v194_v18 = vmul.f32 %v192_v16, %v176_v1 }
  0xee   : > { %v208_v19 = vpack.c.bf16 %v194_v18, %v193_v17 }
  0xf0   : > { %841 = vmatpush3.bf16.msra.mxu1 %v208_v19  ;;  %v210_v20 = vsel %vm179_vm0, %v208_v19, 0 }
  0xf1   : > { %835 = vmatpush3.bf16.xpose.msra.mxu0 %v210_v20  ;;  %846 = vmatprep.subr.bf16.mxu1 %v1072_v7 }
  0xf2   : > { %852 = vmatprep.subr.bf16.mxu0 %v1072_v7 }
  0xf8   : > { %837 = vmatmul.mubr.msk.bf16.vlgmr.msra.gmra.mxu0 %vm179_vm0, %v208_v19 }
  0xf9   : > { %854 = vmatprep.mubr.msk.bf16.mxu0 %vm1073_vm1, %v1072_v7 }
 0x1b8   : > { %v246_v26 = vpop.f32.mrf.mxu0 }
 0x1b9   : > { %v254_v31 = vmul.f32 %v1233_v27, %v246_v26 }
 0x1ba   : > { %v838_v30 = vpop.f32.mrf.mxu0 }
 0x1bb   : > { %v259_v37 = vadd.f32 %v1237_v32, %v254_v31 }
 0x1bc   : > { %v249_v34 = vpop.f32.mrf.mxu0 }
 0x1bd   : > { %v255_v35 = vmul.f32 %v1233_v27, %v249_v34 }
 0x1be   : > { %v839_v36 = vpop.f32.mrf.mxu0 }
 0x1bf   : > { %v260_v38 = vadd.f32 %v1239_v33, %v255_v35 }
 0x1c1   : > { %v261_v39 = vpack.c.bf16 %v260_v38, %v259_v37 }
 0x1c3   : > { %843 = vmatmul.mubr.msk.bf16.vlgmr.msra.gmra.mxu1 %vm179_vm0, %v261_v39 }
 0x1c4   : > { %848 = vmatprep.mubr.msk.bf16.mxu1 %vm1073_vm1, %v1072_v7 }
 0x283   : > { %v299_v40 = vpop.f32.mrf.mxu1 }
 0x285   : > { %v844_v41 = vpop.f32.mrf.mxu1 }
 0x287   : > { %v302_v42 = vpop.f32.mrf.mxu1 }
 0x288   : > { %v306_v43 = vpack.c.bf16 %v302_v42, %v299_v40 }
 0x289   : > { %v845_v44 = vpop.f32.mrf.mxu1 }
 0x28a   : > { %853 = vmatpush3.bf16.msra.mxu0 %v306_v43  ;;  %v308_v45 = vsel %vm179_vm0, %v306_v43, 0 }
 0x28b   : > { %847 = vmatpush3.bf16.xpose.msra.mxu1 %v308_v45  ;;  %864 = vmatprep.subr.bf16.mxu0 %v1072_v7 }
 0x28c   : > { %858 = vmatprep.subr.bf16.mxu1 %v1072_v7 }
 0x292   : > { %849 = vmatmul.mubr.msk.bf16.vlgmr.msra.gmra.mxu1 %vm179_vm0, %v306_v43 }
 0x293   : > { %860 = vmatprep.mubr.msk.bf16.mxu1 %vm1073_vm1, %v1072_v7 }
 0x352   : > { %v344_v46 = vpop.f32.mrf.mxu1 }
 0x353   : > { %v351_v48 = vmul.f32 %v344_v46, %v1233_v27 }
 0x354   : > { %v850_v47 = vpop.f32.mrf.mxu1 }
 0x355   : > { %v353_v52 = vadd.f32 %v351_v48, %v1237_v32 }
 0x356   : > { %v347_v49 = vpop.f32.mrf.mxu1 }
 0x357   : > { %v352_v50 = vmul.f32 %v347_v49, %v1233_v27 }
 0x358   : > { %v851_v51 = vpop.f32.mrf.mxu1 }
 0x359   : > { %v354_v53 = vadd.f32 %v352_v50, %v1239_v33 }
 0x35b   : > { %v355_v54 = vpack.c.bf16 %v354_v53, %v353_v52 }
 0x35d   : > { %855 = vmatmul.mubr.msk.bf16.vlgmr.msra.gmra.mxu0 %vm179_vm0, %v355_v54 }
 0x35e   : > { %866 = vmatprep.mubr.msk.bf16.mxu0 %vm1073_vm1, %v1072_v7 }
 0x41d   : > { %v393_v55 = vpop.f32.mrf.mxu0 }
 0x41f   : > { %v856_v56 = vpop.f32.mrf.mxu0 }
 0x421   : > { %v396_v57 = vpop.f32.mrf.mxu0 }
 0x422   : > { %v400_v58 = vpack.c.bf16 %v396_v57, %v393_v55 }
 0x423   : > { %v857_v59 = vpop.f32.mrf.mxu0 }
 0x424   : > { %865 = vmatpush3.bf16.msra.mxu0 %v400_v58  ;;  %v402_v60 = vsel %vm179_vm0, %v400_v58, 0 }
 0x425   : > { %859 = vmatpush3.bf16.xpose.msra.mxu1 %v402_v60  ;;  %876 = vmatprep.subr.bf16.mxu0 %v1072_v7 }
 0x426   : > { %870 = vmatprep.subr.bf16.mxu1 %v1072_v7 }
 0x42c   : > { %861 = vmatmul.mubr.msk.bf16.vlgmr.msra.gmra.mxu1 %vm179_vm0, %v400_v58 }
 0x42d   : > { %872 = vmatprep.mubr.msk.bf16.mxu1 %vm1073_vm1, %v1072_v7 }
 0x4ec   : > { %v438_v61 = vpop.f32.mrf.mxu1 }
 0x4ed   : > { %v445_v63 = vmul.f32 %v438_v61, %v1233_v27 }
 0x4ee   : > { %v862_v62 = vpop.f32.mrf.mxu1 }
 0x4ef   : > { %v447_v3 = vadd.f32 %v445_v63, %v1237_v32 }
 0x4f0   : > { %v441_v0 = vpop.f32.mrf.mxu1 }
 0x4f1   : > { %v446_v1 = vmul.f32 %v441_v0, %v1233_v27 }
 0x4f2   : > { %v863_v2 = vpop.f32.mrf.mxu1 }
 0x4f3   : > { %v448_v4 = vadd.f32 %v446_v1, %v1239_v33 }
 0x4f5   : > { %v449_v5 = vpack.c.bf16 %v448_v4, %v447_v3 }
 0x4f7   : > { %867 = vmatmul.mubr.msk.bf16.vlgmr.msra.gmra.mxu0 %vm179_vm0, %v449_v5 }
 0x4f8   : > { %878 = vmatprep.mubr.msk.bf16.mxu0 %vm1073_vm1, %v1072_v7 }
 0x5b7   : > { %v487_v6 = vpop.f32.mrf.mxu0 }
 0x5b9   : > { %v868_v8 = vpop.f32.mrf.mxu0 }
 0x5bb   : > { %v490_v9 = vpop.f32.mrf.mxu0 }
 0x5bc   : > { %v494_v10 = vpack.c.bf16 %v490_v9, %v487_v6 }
 0x5bd   : > { %v869_v11 = vpop.f32.mrf.mxu0 }
 0x5be   : > { %877 = vmatpush3.bf16.msra.mxu0 %v494_v10  ;;  %v496_v12 = vsel %vm179_vm0, %v494_v10, 0 }
 0x5bf   : > { %871 = vmatpush3.bf16.xpose.msra.mxu1 %v496_v12  ;;  %888 = vmatprep.subr.bf16.mxu0 %v1072_v7 }
 0x5c0   : > { %882 = vmatprep.subr.bf16.mxu1 %v1072_v7 }
 0x5c6   : > { %873 = vmatmul.mubr.msk.bf16.vlgmr.msra.gmra.mxu1 %vm179_vm0, %v494_v10 }
 0x5c7   : > { %884 = vmatprep.mubr.msk.bf16.mxu1 %vm1073_vm1, %v1072_v7 }
 0x686   : > { %v532_v13 = vpop.f32.mrf.mxu1 }
 0x687   : > { %v539_v15 = vmul.f32 %v532_v13, %v1233_v27 }
 0x688   : > { %v874_v14 = vpop.f32.mrf.mxu1 }
 0x689   : > { %v541_v19 = vadd.f32 %v539_v15, %v1237_v32 }
 0x68a   : > { %v535_v16 = vpop.f32.mrf.mxu1 }
 0x68b   : > { %v540_v17 = vmul.f32 %v535_v16, %v1233_v27 }
 0x68c   : > { %v875_v18 = vpop.f32.mrf.mxu1 }
 0x68d   : > { %v542_v20 = vadd.f32 %v540_v17, %v1239_v33 }
 0x68f   : > { %v543_v21 = vpack.c.bf16 %v542_v20, %v541_v19 }
 0x691   : > { %879 = vmatmul.mubr.msk.bf16.vlgmr.msra.gmra.mxu0 %vm179_vm0, %v543_v21 }
 0x692   : > { %890 = vmatprep.mubr.msk.bf16.mxu0 %vm1073_vm1, %v1072_v7 }
 0x751   : > { %v581_v22 = vpop.f32.mrf.mxu0 }
 0x753   : > { %v880_v23 = vpop.f32.mrf.mxu0 }
 0x755   : > { %v584_v24 = vpop.f32.mrf.mxu0 }
 0x756   : > { %v588_v25 = vpack.c.bf16 %v584_v24, %v581_v22 }
 0x757   : > { %v881_v26 = vpop.f32.mrf.mxu0 }
 0x758   : > { %889 = vmatpush3.bf16.msra.mxu0 %v588_v25  ;;  %v590_v28 = vsel %vm179_vm0, %v588_v25, 0 }
 0x759   : > { %883 = vmatpush3.bf16.xpose.msra.mxu1 %v590_v28 }
 0x760   : > { %885 = vmatmul.mubr.msk.bf16.vlgmr.msra.gmra.mxu1 %vm179_vm0, %v588_v25 }
 0x820   : > { %v626_v29 = vpop.f32.mrf.mxu1 }
 0x821   : > { %v633_v31 = vmul.f32 %v626_v29, %v1233_v27 }
 0x822   : > { %v886_v30 = vpop.f32.mrf.mxu1 }
 0x823   : > { %v635_v36 = vadd.f32 %v633_v31, %v1237_v32 }
 0x824   : > { %v629_v34 = vpop.f32.mrf.mxu1 }
 0x825   : > { %v634_v7 = vmul.f32 %v629_v34, %v1233_v27 }
 0x826   : > { %v887_v35 = vpop.f32.mrf.mxu1 }
 0x827   : > { %v636_v37 = vadd.f32 %v634_v7, %v1239_v33 }
 0x829   : > { %v637_v38 = vpack.c.bf16 %v636_v37, %v635_v36 }
 0x82b   : > { %891 = vmatmul.mubr.msk.bf16.vlgmr.msra.gmra.mxu0 %vm179_vm0, %v637_v38 }
 0x8eb   : > { %v675_v39 = vpop.f32.mrf.mxu0 }
 0x8ec   : > { %682 = vst.msk [vmem:[%s173_s5] sm:$0xff] %vm179_vm0, %v675_v39 }
 0x8ed   : > { %v892_v27 = vpop.f32.mrf.mxu0 }
 0x8ef   : > { %v678_v32 = vpop.f32.mrf.mxu0 }
 0x8f0   : > { %683 = vst.msk [vmem:[%s173_s5 + $0x8] sm:$0xff] %vm179_vm0, %v678_v32 }
 0x8f1   : > { %v893_v33 = vpop.f32.mrf.mxu0 }
 0x8f2   : > { %1011 = shalt.err (!%p1008_p0)
}
 0x8f3   : > { %s1012_s30 = scalar_lea.hbm %s1302_s25, 256  ;;  %s1016_s14 = scalar_lea.hbm %s1348_s2, 512 }
 0x8f4   : > { %p1013_p3 = scmp.ne.s32.totalorder %s1302_s25, %s1012_s30  ;;  %p1017_p1 = scmp.lt.s32.totalorder %s1302_s25, %s1348_s2 }
 0x8f5   : > { %p1018_p6 = scmp.lt.s32.totalorder %s1016_s14, %s1012_s30 }
 0x8f6   : > { %p1014_p5 = pnand %p1013_p3, %p1364_p13 }
 0x8f7   : > { %p1019_p11 = por %p1018_p6, %p1017_p1 }
 0x8f8   : > { %p1015_p4 = pneg %p1014_p5 }
 0x8fa   : > { %p1020_p12 = pnand %p1019_p11, %p1015_p4 }
 0x8fc   : > { %1023 = shalt.err (!%p1020_p12)
}
 0x8fd   : > { %s1075_s20 = smov 128   ;;  %s1076_s23 = smov 8  }
 0x8fe   : > { %900 = dma.vmem_to_hbm [thread:$0]  (%p1364_p13), %s1297_s7, 256, %s1302_s25, %s685_s28, %s1075_s20, %s1075_s20, %s1076_s23  }
 0x8ff PF: > { %s713_s5 = sand.u32 1, %s1054_s9   ;;  %p1365_p7 = scmp.ne.s32.totalorder %s1356_s22, 0 }
 0x900   : > { %p1366_p8 = scmp.ge.s32.totalorder %s1066_s12, 2  ;;  %s714_s8 = scalar_lea.sflag [#allocation4], %s713_s5 }
 0x902   : > { %p911_p9 = pnand %p1366_p8, %p1365_p7 }
 0x904   : > { %p912_p10 = pneg %p911_p9 }
 0x906   : > { %1049 = dma.done.wait (%p912_p10), %s714_s8, 256  }
 0x907   : > { %1051 = vsyncadd (%p912_p10), %s714_s8, 4294967040  ;;  %p16_p2 = scmp.ge.s32.totalorder %s1117_s15, 4   ;;  %s1367_s9 = smov %s1058_s10 }
 0x908   : > { %s1368_s10 = smov %s1062_s11  ;;  %s1369_s11 = smov %s1129_s18 }
 0x909   : > { %s1370_s12 = smov %s1117_s15  ;;  %18 = sbr.rel (!%p16_p2) target bundleno = 6 (0x6), region = 78 }
 0x90e   :  { %719 = vsyncpa [#allocation3], 1 }
 0x90f   :  { %721 = vsyncpa [#allocation3 + $0x1], 1 }
 0x910   :  { %722 = vsyncpa [#allocation4], 1 }
 0x911   :  { %724 = vsyncpa [#allocation4 + $0x1], 1 }
 0x912   :  { %725 = vsyncpa [#allocation5], 1 }
 0x913   :  { %727 = vsyncpa [#allocation5 + $0x1], 1 }

</bundles_post_ra>
